<compile_context>
chip_gen: v7x
topology: tpu7x:2x2x1
jax: 0.10.0
libtpu: 0.0.40
codegen_flags: <defaults>
</compile_context>

<pallas_src>
import numpy as np
import jax
import jax.numpy as jnp
from jax.experimental import pallas as pl
from jax.experimental.pallas import tpu as pltpu


# ------------------------------ fused Pallas kernel ------------------------------

def fastjl_linear_kernel(x_ref, v_ref, cw_ref, w0t_ref, cb_ref, b0_ref, out_ref):
    """Reconstruct W^T and b from the intrinsic vector V, then y = x @ W^T + b.

    x_ref   (B, Fin)        VMEM  activations
    v_ref   (d,)            SMEM  intrinsic vector V (scalar reads)
    cw_ref  (d, Fin, Fout)  VMEM  folded fastJL projection for 'weight', W^T layout
    w0t_ref (Fin, Fout)     VMEM  initial weight, pre-transposed at init
    cb_ref  (d, 1, Fout)    VMEM  folded fastJL projection for 'bias'
    b0_ref  (1, Fout)       VMEM  initial bias (row)
    out_ref (B, Fout)       VMEM  output
    """
    d = cw_ref.shape[0]
    wt = w0t_ref[...]          # (Fin, Fout)
    b = b0_ref[...]            # (1, Fout)
    # theta = theta0 + ray(V): d scalar-broadcast FMAs on the VPU.  Keeps the MXU free
    # and avoids a lane-sparse (N, 1) matvec.  d is small & static -> unrolled.
    for k in range(d):
        vk = v_ref[k]
        wt = wt + vk * cw_ref[k]
        b = b + vk * cb_ref[k]
    # Wrapped nn.Linear forward on the MXU.  (Fout=16 < 128 lanes -> masked stores; fine
    # at this size; pad Fout to a multiple of 128 only if this ever becomes critical.)
    out_ref[...] = jnp.dot(x_ref[...], wt, preferred_element_type=jnp.float32) + b


def fastjl_linear_forward(x, v, cwt, w0t, cb, b0row):
    """FastJLWrapper.forward for a wrapped Linear: one fused pallas_call."""
    B, Fin = x.shape
    d, _, Fout = cwt.shape
    return pl.pallas_call(
        fastjl_linear_kernel,
        out_shape=jax.ShapeDtypeStruct((B, Fout), jnp.float32),
        grid=(1,),
        in_specs=[
            pl.BlockSpec((B, Fin), lambda i: (0, 0)),
            pl.BlockSpec(memory_space=pltpu.MemorySpace.SMEM),      # V -> SMEM scalars
            pl.BlockSpec((d, Fin, Fout), lambda i: (0, 0, 0)),
            pl.BlockSpec((Fin, Fout), lambda i: (0, 0)),
            pl.BlockSpec((d, 1, Fout), lambda i: (0, 0, 0)),
            pl.BlockSpec((1, Fout), lambda i: (0, 0)),
        ],
        out_specs=pl.BlockSpec((B, Fout), lambda i: (0, 0)),
        compiler_params=pltpu.CompilerParams(dimension_semantics=("arbitrary",)),
    )(x, v, cwt, w0t, cb, b0row)


# ------------------------- init-time precompute (hoisted) -------------------------

def _rademacher(key, n):
    # P(+1) == P(-1) == 0.5, float32 (mirrors torch `rademacher`).
    return jnp.where(jax.random.randint(key, (n,), 0, 2) == 0, -1.0, 1.0).astype(jnp.float32)


def _fastjl_vars(key, DD, d):
    """Mirror of torch fastJL_vars(DD, d): returns (D, PP, LL, K) frozen buffers."""
    c1 = 2.0
    K = np.log(d) if d > 6000 else np.sqrt(d)
    LL = int(2 ** int(np.ceil(np.log2(DD))))
    k_d, k_b, k_r = jax.random.split(key, 3)
    D = _rademacher(k_d, LL)
    n = np.log(60000.0) ** 2
    q = min(c1 * n / np.log(d) ** 3, 1.0)
    Bm = jax.random.bernoulli(k_b, p=q, shape=(LL,)).astype(jnp.float32)
    R = jax.random.normal(k_r, (LL,), dtype=jnp.float32) * np.float32(q ** (-1.0 / 3.0))
    return D, Bm * R, LL, np.float32(K)


def _sylvester_hadamard(n):
    # Same ordering as the fast_walsh_hadamard_torched butterfly.
    H = np.ones((1, 1), dtype=np.float32)
    while H.shape[0] < n:
        H = np.block([[H, H], [H, -H]])
    return H


def _fold_fastjl(D, PP, LL, K, DD, d):
    """Fold the frozen fastJL factors into M (DD, d) so that ray_flat = M @ V exactly
    matches fastJL_torched (zero-pad of V when LL >= d, crop when LL < d)."""
    # TODO(synk): for very large wrapped modules, replace the folded dense M by an
    # in-kernel log2(LL)-stage FWHT butterfly (pltpu.roll) tiled over DD.
    H = _sylvester_hadamard(LL)
    deff = min(d, LL)
    M = (np.asarray(PP)[:DD, None] * H[:DD, :deff] * np.asarray(D)[None, :deff]) / K
    if deff < d:
        M = np.concatenate([M, np.zeros((DD, d - deff), np.float32)], axis=1)
    return jnp.asarray(M, dtype=jnp.float32)


def init_fastjl_linear(key, w0, b0, d):
    """FastJLWrapper.__init__ equivalent for a wrapped nn.Linear: draw the frozen fastJL
    buffers per parameter and pre-fold / pre-layout everything the kernel needs."""
    Fout, Fin = w0.shape
    k_w, k_b = jax.random.split(key)
    jl_w = _fastjl_vars(k_w, Fout * Fin, d)           # for 'weight'
    jl_b = _fastjl_vars(k_b, Fout, d)                 # for 'bias'
    Mw = _fold_fastjl(*jl_w, DD=Fout * Fin, d=d)      # (Fout*Fin, d)
    Mb = _fold_fastjl(*jl_b, DD=Fout, d=d)            # (Fout, d)
    # Lay out so the kernel accumulates W^T directly: cwt[k, i, o] = Mw[o*Fin + i, k].
    cwt = jnp.transpose(Mw.reshape(Fout, Fin, d), (2, 1, 0))   # (d, Fin, Fout)
    cb = Mb.T.reshape(d, 1, Fout)                               # (d, 1, Fout)
    statics = dict(cwt=cwt, w0t=w0.T, cb=cb, b0row=b0.reshape(1, Fout))
    return statics, dict(weight=jl_w, bias=jl_b)


# ------------------------- literal pure-JAX reference -------------------------

def _fwht_ref(x):
    """Literal port of fast_walsh_hadamard_torched(x, axis=0, normalize=False)."""
    n = x.shape[0]
    m = int(round(np.log2(n)))
    y = x.reshape((1,) + (2,) * m + (1,))
    for ii in range(m):
        a, b = jnp.split(y, 2, axis=ii + 1)
        y = jnp.concatenate([a + b, a - b], axis=ii + 1)
    return y.reshape(n)


def _fastjl_ref(v, DD, params):
    """Literal port of fastJL_torched(V, DD, param_list)."""
    D, PP, LL, K = params
    dd = v.shape[0]
    v_pad = jnp.concatenate([v, jnp.zeros((LL - dd,), v.dtype)]) if LL >= dd else v[:LL]
    mul_2 = _fwht_ref(D * v_pad)
    return (1.0 / K) * (PP * mul_2)[:DD]


# --------------------------------------- main ---------------------------------------

if __name__ == "__main__":
    B, Fin, Fout, d = 8, 32, 16, 16   # batch, in_features, out_features, intrinsic_dimension

    key = jax.random.PRNGKey(0)
    k_x, k_w, k_b, k_v, k_jl = jax.random.split(key, 5)

    x = jax.random.normal(k_x, (B, Fin), dtype=jnp.float32)

    # Initial values of the wrapped nn.Linear(32, 16)'s parameters.
    w0 = jax.random.normal(k_w, (Fout, Fin), dtype=jnp.float32) * 0.1
    b0 = jax.random.normal(k_b, (Fout,), dtype=jnp.float32) * 0.1

    # NOTE: the module registers V = zeros(intrinsic_dimension); we use a small random V so
    # the fastJL projection path is actually exercised (forward semantics hold for any V).
    V = jax.random.normal(k_v, (d,), dtype=jnp.float32) * 0.1

    statics, jl_params = init_fastjl_linear(k_jl, w0, b0, d)

    fwd = jax.jit(fastjl_linear_forward)
    y = jax.block_until_ready(
        fwd(x, V, statics["cwt"], statics["w0t"], statics["cb"], statics["b0row"])
    )

    # Reference mirrors the torch forward literally: pad -> D* -> FWHT -> PP* -> 1/K -> +init.
    W_ref = w0 + _fastjl_ref(V, Fout * Fin, jl_params["weight"]).reshape(Fout, Fin)
    b_ref = b0 + _fastjl_ref(V, Fout, jl_params["bias"])
    y_ref = x @ W_ref.T + b_ref

    assert y.shape == (B, Fout) and y.dtype == jnp.float32
    assert jnp.allclose(y, y_ref, atol=1e-4, rtol=1e-4), "mismatch vs reference"

    print("KERNEL_OK")
</pallas_src>

<mosaic_0001>
module attributes {stable_mosaic.version = 11 : i64} {
  func.func @fastjl_linear_kernel(%arg0: i32, %arg1: memref<8x32xf32, #tpu.memory_space<vmem>>, %arg2: memref<16xf32, #tpu.memory_space<smem>>, %arg3: memref<16x32x16xf32, #tpu.memory_space<vmem>>, %arg4: memref<32x16xf32, #tpu.memory_space<vmem>>, %arg5: memref<16x1x16xf32, #tpu.memory_space<vmem>>, %arg6: memref<1x16xf32, #tpu.memory_space<vmem>>, %arg7: memref<8x16xf32, #tpu.memory_space<vmem>>) attributes {dimension_semantics = [#tpu.dimension_semantics<arbitrary>], iteration_bounds = array<i64: 1>, scalar_prefetch = 0 : i64, scratch_operands = 0 : i64, tpu.core_type = #tpu.core_type<tc>, window_params = [{pipeline_mode = #tpu.pipeline_mode<synchronous>, transform_indices = @transform_0, window_bounds = array<i64: 8, 32>}, {transform_indices = @transform_1, window_bounds = array<i64: 16>}, {pipeline_mode = #tpu.pipeline_mode<synchronous>, transform_indices = @transform_2, window_bounds = array<i64: 16, 32, 16>}, {pipeline_mode = #tpu.pipeline_mode<synchronous>, transform_indices = @transform_3, window_bounds = array<i64: 32, 16>}, {pipeline_mode = #tpu.pipeline_mode<synchronous>, transform_indices = @transform_4, window_bounds = array<i64: 16, 1, 16>}, {pipeline_mode = #tpu.pipeline_mode<synchronous>, transform_indices = @transform_5, window_bounds = array<i64: 1, 16>}, {pipeline_mode = #tpu.pipeline_mode<synchronous>, transform_indices = @transform_6, window_bounds = array<i64: 8, 16>}]} {
    %c0 = arith.constant 0 : index
    %c0_0 = arith.constant 0 : index
    %0 = vector.load %arg4[%c0, %c0_0] : memref<32x16xf32, #tpu.memory_space<vmem>>, vector<32x16xf32>
    %c0_1 = arith.constant 0 : index
    %c0_2 = arith.constant 0 : index
    %1 = vector.load %arg6[%c0_1, %c0_2] : memref<1x16xf32, #tpu.memory_space<vmem>>, vector<1x16xf32>
    %c0_3 = arith.constant 0 : index
    %2 = memref.load %arg2[%c0_3] : memref<16xf32, #tpu.memory_space<smem>>
    %c0_4 = arith.constant 0 : index
    %c0_5 = arith.constant 0 : index
    %c0_6 = arith.constant 0 : index
    %3 = vector.load %arg3[%c0_4, %c0_5, %c0_6] : memref<16x32x16xf32, #tpu.memory_space<vmem>>, vector<1x32x16xf32>
    %4 = vector.shape_cast %3 : vector<1x32x16xf32> to vector<32x16xf32>
    %5 = vector.broadcast %2 : f32 to vector<32x16xf32>
    %6 = arith.mulf %5, %4 : vector<32x16xf32>
    %7 = arith.addf %0, %6 : vector<32x16xf32>
    %c0_7 = arith.constant 0 : index
    %c0_8 = arith.constant 0 : index
    %c0_9 = arith.constant 0 : index
    %8 = vector.load %arg5[%c0_7, %c0_8, %c0_9] : memref<16x1x16xf32, #tpu.memory_space<vmem>>, vector<1x1x16xf32>
    %9 = vector.shape_cast %8 : vector<1x1x16xf32> to vector<1x16xf32>
    %10 = vector.broadcast %2 : f32 to vector<1x16xf32>
    %11 = arith.mulf %10, %9 : vector<1x16xf32>
    %12 = arith.addf %1, %11 : vector<1x16xf32>
    %c1 = arith.constant 1 : index
    %13 = memref.load %arg2[%c1] : memref<16xf32, #tpu.memory_space<smem>>
    %c1_10 = arith.constant 1 : index
    %c0_11 = arith.constant 0 : index
    %c0_12 = arith.constant 0 : index
    %14 = vector.load %arg3[%c1_10, %c0_11, %c0_12] : memref<16x32x16xf32, #tpu.memory_space<vmem>>, vector<1x32x16xf32>
    %15 = vector.shape_cast %14 : vector<1x32x16xf32> to vector<32x16xf32>
    %16 = vector.broadcast %13 : f32 to vector<32x16xf32>
    %17 = arith.mulf %16, %15 : vector<32x16xf32>
    %18 = arith.addf %7, %17 : vector<32x16xf32>
    %c1_13 = arith.constant 1 : index
    %c0_14 = arith.constant 0 : index
    %c0_15 = arith.constant 0 : index
    %19 = vector.load %arg5[%c1_13, %c0_14, %c0_15] : memref<16x1x16xf32, #tpu.memory_space<vmem>>, vector<1x1x16xf32>
    %20 = vector.shape_cast %19 : vector<1x1x16xf32> to vector<1x16xf32>
    %21 = vector.broadcast %13 : f32 to vector<1x16xf32>
    %22 = arith.mulf %21, %20 : vector<1x16xf32>
    %23 = arith.addf %12, %22 : vector<1x16xf32>
    %c2 = arith.constant 2 : index
    %24 = memref.load %arg2[%c2] : memref<16xf32, #tpu.memory_space<smem>>
    %c2_16 = arith.constant 2 : index
    %c0_17 = arith.constant 0 : index
    %c0_18 = arith.constant 0 : index
    %25 = vector.load %arg3[%c2_16, %c0_17, %c0_18] : memref<16x32x16xf32, #tpu.memory_space<vmem>>, vector<1x32x16xf32>
    %26 = vector.shape_cast %25 : vector<1x32x16xf32> to vector<32x16xf32>
    %27 = vector.broadcast %24 : f32 to vector<32x16xf32>
    %28 = arith.mulf %27, %26 : vector<32x16xf32>
    %29 = arith.addf %18, %28 : vector<32x16xf32>
    %c2_19 = arith.constant 2 : index
    %c0_20 = arith.constant 0 : index
    %c0_21 = arith.constant 0 : index
    %30 = vector.load %arg5[%c2_19, %c0_20, %c0_21] : memref<16x1x16xf32, #tpu.memory_space<vmem>>, vector<1x1x16xf32>
    %31 = vector.shape_cast %30 : vector<1x1x16xf32> to vector<1x16xf32>
    %32 = vector.broadcast %24 : f32 to vector<1x16xf32>
    %33 = arith.mulf %32, %31 : vector<1x16xf32>
    %34 = arith.addf %23, %33 : vector<1x16xf32>
    %c3 = arith.constant 3 : index
    %35 = memref.load %arg2[%c3] : memref<16xf32, #tpu.memory_space<smem>>
    %c3_22 = arith.constant 3 : index
    %c0_23 = arith.constant 0 : index
    %c0_24 = arith.constant 0 : index
    %36 = vector.load %arg3[%c3_22, %c0_23, %c0_24] : memref<16x32x16xf32, #tpu.memory_space<vmem>>, vector<1x32x16xf32>
    %37 = vector.shape_cast %36 : vector<1x32x16xf32> to vector<32x16xf32>
    %38 = vector.broadcast %35 : f32 to vector<32x16xf32>
    %39 = arith.mulf %38, %37 : vector<32x16xf32>
    %40 = arith.addf %29, %39 : vector<32x16xf32>
    %c3_25 = arith.constant 3 : index
    %c0_26 = arith.constant 0 : index
    %c0_27 = arith.constant 0 : index
    %41 = vector.load %arg5[%c3_25, %c0_26, %c0_27] : memref<16x1x16xf32, #tpu.memory_space<vmem>>, vector<1x1x16xf32>
    %42 = vector.shape_cast %41 : vector<1x1x16xf32> to vector<1x16xf32>
    %43 = vector.broadcast %35 : f32 to vector<1x16xf32>
    %44 = arith.mulf %43, %42 : vector<1x16xf32>
    %45 = arith.addf %34, %44 : vector<1x16xf32>
    %c4 = arith.constant 4 : index
    %46 = memref.load %arg2[%c4] : memref<16xf32, #tpu.memory_space<smem>>
    %c4_28 = arith.constant 4 : index
    %c0_29 = arith.constant 0 : index
    %c0_30 = arith.constant 0 : index
    %47 = vector.load %arg3[%c4_28, %c0_29, %c0_30] : memref<16x32x16xf32, #tpu.memory_space<vmem>>, vector<1x32x16xf32>
    %48 = vector.shape_cast %47 : vector<1x32x16xf32> to vector<32x16xf32>
    %49 = vector.broadcast %46 : f32 to vector<32x16xf32>
    %50 = arith.mulf %49, %48 : vector<32x16xf32>
    %51 = arith.addf %40, %50 : vector<32x16xf32>
    %c4_31 = arith.constant 4 : index
    %c0_32 = arith.constant 0 : index
    %c0_33 = arith.constant 0 : index
    %52 = vector.load %arg5[%c4_31, %c0_32, %c0_33] : memref<16x1x16xf32, #tpu.memory_space<vmem>>, vector<1x1x16xf32>
    %53 = vector.shape_cast %52 : vector<1x1x16xf32> to vector<1x16xf32>
    %54 = vector.broadcast %46 : f32 to vector<1x16xf32>
    %55 = arith.mulf %54, %53 : vector<1x16xf32>
    %56 = arith.addf %45, %55 : vector<1x16xf32>
    %c5 = arith.constant 5 : index
    %57 = memref.load %arg2[%c5] : memref<16xf32, #tpu.memory_space<smem>>
    %c5_34 = arith.constant 5 : index
    %c0_35 = arith.constant 0 : index
    %c0_36 = arith.constant 0 : index
    %58 = vector.load %arg3[%c5_34, %c0_35, %c0_36] : memref<16x32x16xf32, #tpu.memory_space<vmem>>, vector<1x32x16xf32>
    %59 = vector.shape_cast %58 : vector<1x32x16xf32> to vector<32x16xf32>
    %60 = vector.broadcast %57 : f32 to vector<32x16xf32>
    %61 = arith.mulf %60, %59 : vector<32x16xf32>
    %62 = arith.addf %51, %61 : vector<32x16xf32>
    %c5_37 = arith.constant 5 : index
    %c0_38 = arith.constant 0 : index
    %c0_39 = arith.constant 0 : index
    %63 = vector.load %arg5[%c5_37, %c0_38, %c0_39] : memref<16x1x16xf32, #tpu.memory_space<vmem>>, vector<1x1x16xf32>
    %64 = vector.shape_cast %63 : vector<1x1x16xf32> to vector<1x16xf32>
    %65 = vector.broadcast %57 : f32 to vector<1x16xf32>
    %66 = arith.mulf %65, %64 : vector<1x16xf32>
    %67 = arith.addf %56, %66 : vector<1x16xf32>
    %c6 = arith.constant 6 : index
    %68 = memref.load %arg2[%c6] : memref<16xf32, #tpu.memory_space<smem>>
    %c6_40 = arith.constant 6 : index
    %c0_41 = arith.constant 0 : index
    %c0_42 = arith.constant 0 : index
    %69 = vector.load %arg3[%c6_40, %c0_41, %c0_42] : memref<16x32x16xf32, #tpu.memory_space<vmem>>, vector<1x32x16xf32>
    %70 = vector.shape_cast %69 : vector<1x32x16xf32> to vector<32x16xf32>
    %71 = vector.broadcast %68 : f32 to vector<32x16xf32>
    %72 = arith.mulf %71, %70 : vector<32x16xf32>
    %73 = arith.addf %62, %72 : vector<32x16xf32>
    %c6_43 = arith.constant 6 : index
    %c0_44 = arith.constant 0 : index
    %c0_45 = arith.constant 0 : index
    %74 = vector.load %arg5[%c6_43, %c0_44, %c0_45] : memref<16x1x16xf32, #tpu.memory_space<vmem>>, vector<1x1x16xf32>
    %75 = vector.shape_cast %74 : vector<1x1x16xf32> to vector<1x16xf32>
    %76 = vector.broadcast %68 : f32 to vector<1x16xf32>
    %77 = arith.mulf %76, %75 : vector<1x16xf32>
    %78 = arith.addf %67, %77 : vector<1x16xf32>
    %c7 = arith.constant 7 : index
    %79 = memref.load %arg2[%c7] : memref<16xf32, #tpu.memory_space<smem>>
    %c7_46 = arith.constant 7 : index
    %c0_47 = arith.constant 0 : index
    %c0_48 = arith.constant 0 : index
    %80 = vector.load %arg3[%c7_46, %c0_47, %c0_48] : memref<16x32x16xf32, #tpu.memory_space<vmem>>, vector<1x32x16xf32>
    %81 = vector.shape_cast %80 : vector<1x32x16xf32> to vector<32x16xf32>
    %82 = vector.broadcast %79 : f32 to vector<32x16xf32>
    %83 = arith.mulf %82, %81 : vector<32x16xf32>
    %84 = arith.addf %73, %83 : vector<32x16xf32>
    %c7_49 = arith.constant 7 : index
    %c0_50 = arith.constant 0 : index
    %c0_51 = arith.constant 0 : index
    %85 = vector.load %arg5[%c7_49, %c0_50, %c0_51] : memref<16x1x16xf32, #tpu.memory_space<vmem>>, vector<1x1x16xf32>
    %86 = vector.shape_cast %85 : vector<1x1x16xf32> to vector<1x16xf32>
    %87 = vector.broadcast %79 : f32 to vector<1x16xf32>
    %88 = arith.mulf %87, %86 : vector<1x16xf32>
    %89 = arith.addf %78, %88 : vector<1x16xf32>
    %c8 = arith.constant 8 : index
    %90 = memref.load %arg2[%c8] : memref<16xf32, #tpu.memory_space<smem>>
    %c8_52 = arith.constant 8 : index
    %c0_53 = arith.constant 0 : index
    %c0_54 = arith.constant 0 : index
    %91 = vector.load %arg3[%c8_52, %c0_53, %c0_54] : memref<16x32x16xf32, #tpu.memory_space<vmem>>, vector<1x32x16xf32>
    %92 = vector.shape_cast %91 : vector<1x32x16xf32> to vector<32x16xf32>
    %93 = vector.broadcast %90 : f32 to vector<32x16xf32>
    %94 = arith.mulf %93, %92 : vector<32x16xf32>
    %95 = arith.addf %84, %94 : vector<32x16xf32>
    %c8_55 = arith.constant 8 : index
    %c0_56 = arith.constant 0 : index
    %c0_57 = arith.constant 0 : index
    %96 = vector.load %arg5[%c8_55, %c0_56, %c0_57] : memref<16x1x16xf32, #tpu.memory_space<vmem>>, vector<1x1x16xf32>
    %97 = vector.shape_cast %96 : vector<1x1x16xf32> to vector<1x16xf32>
    %98 = vector.broadcast %90 : f32 to vector<1x16xf32>
    %99 = arith.mulf %98, %97 : vector<1x16xf32>
    %100 = arith.addf %89, %99 : vector<1x16xf32>
    %c9 = arith.constant 9 : index
    %101 = memref.load %arg2[%c9] : memref<16xf32, #tpu.memory_space<smem>>
    %c9_58 = arith.constant 9 : index
    %c0_59 = arith.constant 0 : index
    %c0_60 = arith.constant 0 : index
    %102 = vector.load %arg3[%c9_58, %c0_59, %c0_60] : memref<16x32x16xf32, #tpu.memory_space<vmem>>, vector<1x32x16xf32>
    %103 = vector.shape_cast %102 : vector<1x32x16xf32> to vector<32x16xf32>
    %104 = vector.broadcast %101 : f32 to vector<32x16xf32>
    %105 = arith.mulf %104, %103 : vector<32x16xf32>
    %106 = arith.addf %95, %105 : vector<32x16xf32>
    %c9_61 = arith.constant 9 : index
    %c0_62 = arith.constant 0 : index
    %c0_63 = arith.constant 0 : index
    %107 = vector.load %arg5[%c9_61, %c0_62, %c0_63] : memref<16x1x16xf32, #tpu.memory_space<vmem>>, vector<1x1x16xf32>
    %108 = vector.shape_cast %107 : vector<1x1x16xf32> to vector<1x16xf32>
    %109 = vector.broadcast %101 : f32 to vector<1x16xf32>
    %110 = arith.mulf %109, %108 : vector<1x16xf32>
    %111 = arith.addf %100, %110 : vector<1x16xf32>
    %c10 = arith.constant 10 : index
    %112 = memref.load %arg2[%c10] : memref<16xf32, #tpu.memory_space<smem>>
    %c10_64 = arith.constant 10 : index
    %c0_65 = arith.constant 0 : index
    %c0_66 = arith.constant 0 : index
    %113 = vector.load %arg3[%c10_64, %c0_65, %c0_66] : memref<16x32x16xf32, #tpu.memory_space<vmem>>, vector<1x32x16xf32>
    %114 = vector.shape_cast %113 : vector<1x32x16xf32> to vector<32x16xf32>
    %115 = vector.broadcast %112 : f32 to vector<32x16xf32>
    %116 = arith.mulf %115, %114 : vector<32x16xf32>
    %117 = arith.addf %106, %116 : vector<32x16xf32>
    %c10_67 = arith.constant 10 : index
    %c0_68 = arith.constant 0 : index
    %c0_69 = arith.constant 0 : index
    %118 = vector.load %arg5[%c10_67, %c0_68, %c0_69] : memref<16x1x16xf32, #tpu.memory_space<vmem>>, vector<1x1x16xf32>
    %119 = vector.shape_cast %118 : vector<1x1x16xf32> to vector<1x16xf32>
    %120 = vector.broadcast %112 : f32 to vector<1x16xf32>
    %121 = arith.mulf %120, %119 : vector<1x16xf32>
    %122 = arith.addf %111, %121 : vector<1x16xf32>
    %c11 = arith.constant 11 : index
    %123 = memref.load %arg2[%c11] : memref<16xf32, #tpu.memory_space<smem>>
    %c11_70 = arith.constant 11 : index
    %c0_71 = arith.constant 0 : index
    %c0_72 = arith.constant 0 : index
    %124 = vector.load %arg3[%c11_70, %c0_71, %c0_72] : memref<16x32x16xf32, #tpu.memory_space<vmem>>, vector<1x32x16xf32>
    %125 = vector.shape_cast %124 : vector<1x32x16xf32> to vector<32x16xf32>
    %126 = vector.broadcast %123 : f32 to vector<32x16xf32>
    %127 = arith.mulf %126, %125 : vector<32x16xf32>
    %128 = arith.addf %117, %127 : vector<32x16xf32>
    %c11_73 = arith.constant 11 : index
    %c0_74 = arith.constant 0 : index
    %c0_75 = arith.constant 0 : index
    %129 = vector.load %arg5[%c11_73, %c0_74, %c0_75] : memref<16x1x16xf32, #tpu.memory_space<vmem>>, vector<1x1x16xf32>
    %130 = vector.shape_cast %129 : vector<1x1x16xf32> to vector<1x16xf32>
    %131 = vector.broadcast %123 : f32 to vector<1x16xf32>
    %132 = arith.mulf %131, %130 : vector<1x16xf32>
    %133 = arith.addf %122, %132 : vector<1x16xf32>
    %c12 = arith.constant 12 : index
    %134 = memref.load %arg2[%c12] : memref<16xf32, #tpu.memory_space<smem>>
    %c12_76 = arith.constant 12 : index
    %c0_77 = arith.constant 0 : index
    %c0_78 = arith.constant 0 : index
    %135 = vector.load %arg3[%c12_76, %c0_77, %c0_78] : memref<16x32x16xf32, #tpu.memory_space<vmem>>, vector<1x32x16xf32>
    %136 = vector.shape_cast %135 : vector<1x32x16xf32> to vector<32x16xf32>
    %137 = vector.broadcast %134 : f32 to vector<32x16xf32>
    %138 = arith.mulf %137, %136 : vector<32x16xf32>
    %139 = arith.addf %128, %138 : vector<32x16xf32>
    %c12_79 = arith.constant 12 : index
    %c0_80 = arith.constant 0 : index
    %c0_81 = arith.constant 0 : index
    %140 = vector.load %arg5[%c12_79, %c0_80, %c0_81] : memref<16x1x16xf32, #tpu.memory_space<vmem>>, vector<1x1x16xf32>
    %141 = vector.shape_cast %140 : vector<1x1x16xf32> to vector<1x16xf32>
    %142 = vector.broadcast %134 : f32 to vector<1x16xf32>
    %143 = arith.mulf %142, %141 : vector<1x16xf32>
    %144 = arith.addf %133, %143 : vector<1x16xf32>
    %c13 = arith.constant 13 : index
    %145 = memref.load %arg2[%c13] : memref<16xf32, #tpu.memory_space<smem>>
    %c13_82 = arith.constant 13 : index
    %c0_83 = arith.constant 0 : index
    %c0_84 = arith.constant 0 : index
    %146 = vector.load %arg3[%c13_82, %c0_83, %c0_84] : memref<16x32x16xf32, #tpu.memory_space<vmem>>, vector<1x32x16xf32>
    %147 = vector.shape_cast %146 : vector<1x32x16xf32> to vector<32x16xf32>
    %148 = vector.broadcast %145 : f32 to vector<32x16xf32>
    %149 = arith.mulf %148, %147 : vector<32x16xf32>
    %150 = arith.addf %139, %149 : vector<32x16xf32>
    %c13_85 = arith.constant 13 : index
    %c0_86 = arith.constant 0 : index
    %c0_87 = arith.constant 0 : index
    %151 = vector.load %arg5[%c13_85, %c0_86, %c0_87] : memref<16x1x16xf32, #tpu.memory_space<vmem>>, vector<1x1x16xf32>
    %152 = vector.shape_cast %151 : vector<1x1x16xf32> to vector<1x16xf32>
    %153 = vector.broadcast %145 : f32 to vector<1x16xf32>
    %154 = arith.mulf %153, %152 : vector<1x16xf32>
    %155 = arith.addf %144, %154 : vector<1x16xf32>
    %c14 = arith.constant 14 : index
    %156 = memref.load %arg2[%c14] : memref<16xf32, #tpu.memory_space<smem>>
    %c14_88 = arith.constant 14 : index
    %c0_89 = arith.constant 0 : index
    %c0_90 = arith.constant 0 : index
    %157 = vector.load %arg3[%c14_88, %c0_89, %c0_90] : memref<16x32x16xf32, #tpu.memory_space<vmem>>, vector<1x32x16xf32>
    %158 = vector.shape_cast %157 : vector<1x32x16xf32> to vector<32x16xf32>
    %159 = vector.broadcast %156 : f32 to vector<32x16xf32>
    %160 = arith.mulf %159, %158 : vector<32x16xf32>
    %161 = arith.addf %150, %160 : vector<32x16xf32>
    %c14_91 = arith.constant 14 : index
    %c0_92 = arith.constant 0 : index
    %c0_93 = arith.constant 0 : index
    %162 = vector.load %arg5[%c14_91, %c0_92, %c0_93] : memref<16x1x16xf32, #tpu.memory_space<vmem>>, vector<1x1x16xf32>
    %163 = vector.shape_cast %162 : vector<1x1x16xf32> to vector<1x16xf32>
    %164 = vector.broadcast %156 : f32 to vector<1x16xf32>
    %165 = arith.mulf %164, %163 : vector<1x16xf32>
    %166 = arith.addf %155, %165 : vector<1x16xf32>
    %c15 = arith.constant 15 : index
    %167 = memref.load %arg2[%c15] : memref<16xf32, #tpu.memory_space<smem>>
    %c15_94 = arith.constant 15 : index
    %c0_95 = arith.constant 0 : index
    %c0_96 = arith.constant 0 : index
    %168 = vector.load %arg3[%c15_94, %c0_95, %c0_96] : memref<16x32x16xf32, #tpu.memory_space<vmem>>, vector<1x32x16xf32>
    %169 = vector.shape_cast %168 : vector<1x32x16xf32> to vector<32x16xf32>
    %170 = vector.broadcast %167 : f32 to vector<32x16xf32>
    %171 = arith.mulf %170, %169 : vector<32x16xf32>
    %172 = arith.addf %161, %171 : vector<32x16xf32>
    %c15_97 = arith.constant 15 : index
    %c0_98 = arith.constant 0 : index
    %c0_99 = arith.constant 0 : index
    %173 = vector.load %arg5[%c15_97, %c0_98, %c0_99] : memref<16x1x16xf32, #tpu.memory_space<vmem>>, vector<1x1x16xf32>
    %174 = vector.shape_cast %173 : vector<1x1x16xf32> to vector<1x16xf32>
    %175 = vector.broadcast %167 : f32 to vector<1x16xf32>
    %176 = arith.mulf %175, %174 : vector<1x16xf32>
    %177 = arith.addf %166, %176 : vector<1x16xf32>
    %c0_100 = arith.constant 0 : index
    %c0_101 = arith.constant 0 : index
    %178 = vector.load %arg1[%c0_100, %c0_101] : memref<8x32xf32, #tpu.memory_space<vmem>>, vector<8x32xf32>
    %cst = arith.constant dense<0.000000e+00> : vector<8x16xf32>
    %179 = tpu.matmul %178, %172, %cst {dimension_numbers = #tpu.dot_dimension_numbers<[1], [0], [0], [1], [0, 0, 1, 1], [], []>} : vector<8x32xf32>, vector<32x16xf32>, vector<8x16xf32> -> vector<8x16xf32>
    %180 = vector.broadcast %177 : vector<1x16xf32> to vector<8x16xf32>
    %181 = arith.addf %179, %180 : vector<8x16xf32>
    %c0_102 = arith.constant 0 : index
    %c0_103 = arith.constant 0 : index
    %182 = vector.load %arg7[%c0_102, %c0_103] : memref<8x16xf32, #tpu.memory_space<vmem>>, vector<8x16xf32>
    tpu.vector_store %arg7[%c0_102, %c0_103], %181 {strides = array<i32>} : memref<8x16xf32, #tpu.memory_space<vmem>>, vector<8x16xf32>,
    return
  }
  func.func @transform_0(%arg0: i32) -> (i32, i32) {
    %c0_i32 = arith.constant 0 : i32
    %c0_i32_0 = arith.constant 0 : i32
    %c0_i32_1 = arith.constant 0 : i32
    return %c0_i32, %c0_i32_0 : i32, i32
  }
  func.func @transform_1(%arg0: i32) -> i32 {
    %c0_i32 = arith.constant 0 : i32
    %c0_i32_0 = arith.constant 0 : i32
    return %c0_i32 : i32
  }
  func.func @transform_2(%arg0: i32) -> (i32, i32, i32) {
    %c0_i32 = arith.constant 0 : i32
    %c0_i32_0 = arith.constant 0 : i32
    %c0_i32_1 = arith.constant 0 : i32
    %c0_i32_2 = arith.constant 0 : i32
    return %c0_i32, %c0_i32_0, %c0_i32_1 : i32, i32, i32
  }
  func.func @transform_3(%arg0: i32) -> (i32, i32) {
    %c0_i32 = arith.constant 0 : i32
    %c0_i32_0 = arith.constant 0 : i32
    %c0_i32_1 = arith.constant 0 : i32
    return %c0_i32, %c0_i32_0 : i32, i32
  }
  func.func @transform_4(%arg0: i32) -> (i32, i32, i32) {
    %c0_i32 = arith.constant 0 : i32
    %c0_i32_0 = arith.constant 0 : i32
    %c0_i32_1 = arith.constant 0 : i32
    %c0_i32_2 = arith.constant 0 : i32
    return %c0_i32, %c0_i32_0, %c0_i32_1 : i32, i32, i32
  }
  func.func @transform_5(%arg0: i32) -> (i32, i32) {
    %c0_i32 = arith.constant 0 : i32
    %c0_i32_0 = arith.constant 0 : i32
    %c0_i32_1 = arith.constant 0 : i32
    return %c0_i32, %c0_i32_0 : i32, i32
  }
  func.func @transform_6(%arg0: i32) -> (i32, i32) {
    %c0_i32 = arith.constant 0 : i32
    %c0_i32_0 = arith.constant 0 : i32
    %c0_i32_1 = arith.constant 0 : i32
    return %c0_i32, %c0_i32_0 : i32, i32
  }
}

</mosaic_0001>

<bundles_post_ra>
// kernel: fastjl_linear_forward.1
= control target key start
LH: loop header
LB: loop body
LE: loop exit
PB: predicated region body
PF: predicated region fallthrough
CT: control target
= control target key end

     0   :  { %11 = vsyncpa [#allocation4], 0  ;;  %s1061_s0 = inlined_call_operand.vmem [shape: f32[8,32], index: 0, kind: input, shape index: {}]   ;;  %s1062_s1 = inlined_call_operand.vmem [shape: f32[16], index: 1, kind: input, shape index: {}]   ;;  %s1063_s2 = inlined_call_operand.vmem [shape: f32[16,32,16], index: 2, kind: input, shape index: {}]   ;;  %s1064_s3 = inlined_call_operand.vmem [shape: f32[32,16], index: 3, kind: input, shape index: {}]   ;;  %s1065_s4 = inlined_call_operand.vmem [shape: f32[16,1,16], index: 4, kind: input, shape index: {}]   ;;  %s1066_s5 = inlined_call_operand.vmem [shape: f32[1,16], index: 5, kind: input, shape index: {}]   ;;  %s1067_s6 = inlined_call_operand.hbm [shape: f32[8,16], index: 6, kind: output, shape index: {}]  }
   0x1   :  { %12 = vsyncpa [#allocation3], 0  ;;  %s21_s23 = sshll.u32 %s1062_s1, 4  ;;  %s22_s23 = int_to_ptr.vmem [resolvable:$true] %s21_s23 }
   0x2   :  { %s560_s24 = scalar_lea.vmem %s22_s23, 16  ;;  %p565_p1 = scmp.lt.s32.totalorder %s22_s23, %s22_s23 }
   0x3   :  { %p561_p0 = scmp.ne.s32.totalorder %s22_s23, %s560_s24  ;;  %p566_p2 = scmp.lt.s32.totalorder %s560_s24, %s560_s24 }
   0x5   :  { %p567_p3 = por %p566_p2, %p565_p1 }
   0x7   :  { %p568_p4 = pnand %p567_p3, %p561_p0 }
   0x9   :  { %571 = shalt.err (!%p568_p4)
}
   0xa   :  { %s598_s25 = smov [#allocation2]  }
   0xb   :  { %24 = dma.vmem_to_smem %s22_s23, 16, %s598_s25, [#allocation4]  }
   0xc   :  { %594 = dma.done.wait [#allocation4], 16  }
   0xd   :  { %595 = vsyncadd [#allocation4], 4294967280 }
   0xe   :  { %36 = sfence }
   0xf   :  { %s42_s26 = sld [smem:[#allocation2]]  ;;  %v599_v0 = vmov 0.0|0.0   ;;  %s442_s27 = sld [smem:[#allocation2 + $0x1]]  ;;  %v43_v1 = vld [vmem:[%s1063_s2] sm:$0xff]  ;;  %v44_v2 = vld [vmem:[%s1063_s2 + $0x8] sm:$0xff]  ;;  %vm600_vm0 = vmmov 0  }
  0x10   :  { %549 = vmatprep.subr.bf16.mxu0 %v599_v0  ;;  %s448_s28 = sld [smem:[#allocation2 + $0x2]]  ;;  %s454_s1 = sld [smem:[#allocation2 + $0x3]]  ;;  %v601_v3 = vmov 0.0   ;;  %v37_v4 = vld [vmem:[%s1064_s3] sm:$0xff]  ;;  %v444_v6 = vld [vmem:[%s1063_s2 + $0x28] sm:$0xff]  ;;  %vm351_vm1 = vcmask 261120  }
  0x11   :  { %s642_s29 = sld [smem:[#allocation2 + $0x4]]  ;;  %s650_s10 = sld [smem:[#allocation2 + $0x5]]  ;;  %546 = vmatprep.mubr.msk.f32.mxu0 %vm600_vm0, %v601_v3  ;;  %v443_v5 = vld [vmem:[%s1063_s2 + $0x20] sm:$0xff]  ;;  %v38_v7 = vld [vmem:[%s1064_s3 + $0x8] sm:$0xff]  ;;  %vm425_vm2 = vcmask 130048  }
  0x12   :  { %s661_s17 = sld [smem:[#allocation2 + $0x6]]  ;;  %v449_v9 = vld [vmem:[%s1063_s2 + $0x40] sm:$0xff]  ;;  %v450_v10 = vld [vmem:[%s1063_s2 + $0x48] sm:$0xff]  ;;  %s697_s9 = sld [smem:[#allocation2 + $0x8]] }
  0x13   :  { %v455_v14 = vld [vmem:[%s1063_s2 + $0x60] sm:$0xff]  ;;  %v456_v18 = vld [vmem:[%s1063_s2 + $0x68] sm:$0xff]  ;;  %s708_s12 = sld [smem:[#allocation2 + $0xa]]  ;;  %s717_s15 = sld [smem:[#allocation2 + $0xb]] }
  0x14   :  { %v461_v24 = vld [vmem:[%s1063_s2 + $0x80] sm:$0xff]  ;;  %v462_v26 = vld [vmem:[%s1063_s2 + $0x88] sm:$0xff]  ;;  %s734_s21 = sld [smem:[#allocation2 + $0xc]]  ;;  %s766_s13 = sld [smem:[#allocation2 + $0xd]] }
  0x15   :  { %v666_v8 = vstv %s42_s26  ;;  %v676_v13 = vstv %s442_s27  ;;  %s681_s26 = sld [smem:[#allocation2 + $0x7]]  ;;  %v467_v31 = vld [vmem:[%s1063_s2 + $0xa0] sm:$0xff]  ;;  %v468_v34 = vld [vmem:[%s1063_s2 + $0xa8] sm:$0xff]  ;;  %s806_s30 = sld [smem:[#allocation2 + $0xe]] }
  0x16   :  { %v48_v11 = vmul.f32 %v666_v8, %v43_v1  ;;  %v49_v12 = vmul.f32 %v666_v8, %v44_v2  ;;  %v66_v15 = vmul.f32 %v443_v5, %v676_v13  ;;  %v67_v16 = vmul.f32 %v444_v6, %v676_v13  ;;  %v473_v38 = vld [vmem:[%s1063_s2 + $0xc0] sm:$0xff]  ;;  %v474_v39 = vld [vmem:[%s1063_s2 + $0xc8] sm:$0xff]  ;;  %v46_v5 = vld [vmem:[%s1063_s2 + $0x18] sm:$0xff]  ;;  %s602_s14 = smov [#allocation5]  }
  0x17   :  { %v685_v17 = vstv %s448_s28  ;;  %v690_v19 = vstv %s454_s1  ;;  %s699_s28 = sld [smem:[#allocation2 + $0x9]]  ;;  %v706_v27 = vstv %s642_s29  ;;  %v715_v32 = vstv %s650_s10  ;;  %s433_s16 = sshll.u32 %s602_s14, 4  ;;  %s434_s16 = int_to_ptr.vmem [resolvable:$true] %s433_s16 }
  0x18   :  { %v52_v20 = vadd.f32 %v48_v11, %v37_v4  ;;  %v53_v21 = vadd.f32 %v49_v12, %v38_v7  ;;  %v85_v22 = vmul.f32 %v449_v9, %v685_v17  ;;  %v86_v23 = vmul.f32 %v450_v10, %v685_v17  ;;  %v479_v45 = vld [vmem:[%s1063_s2 + $0xe0] sm:$0xff]  ;;  %v480_v49 = vld [vmem:[%s1063_s2 + $0xe8] sm:$0xff]  ;;  %v45_v4 = vld [vmem:[%s1063_s2 + $0x10] sm:$0xff]  ;;  %p577_p6 = scmp.lt.s32.totalorder %s434_s16, %s434_s16 }
  0x19   :  { %v104_v25 = vmul.f32 %v455_v14, %v690_v19  ;;  %v105_v30 = vmul.f32 %v456_v18, %v690_v19  ;;  %v123_v33 = vmul.f32 %v461_v24, %v706_v27  ;;  %v124_v37 = vmul.f32 %v462_v26, %v706_v27  ;;  %v485_v50 = vld [vmem:[%s1063_s2 + $0x100] sm:$0xff]  ;;  %v486_v51 = vld [vmem:[%s1063_s2 + $0x108] sm:$0xff]  ;;  %v39_v11 = vld [vmem:[%s1064_s3 + $0x10] sm:$0xff] }
  0x1a   :  { %v70_v28 = vadd.f32 %v66_v15, %v52_v20  ;;  %v71_v29 = vadd.f32 %v67_v16, %v53_v21  ;;  %v731_v40 = vstv %s661_s17  ;;  %v142_v41 = vmul.f32 %v467_v31, %v715_v32  ;;  %v491_v55 = vld [vmem:[%s1063_s2 + $0x120] sm:$0xff]  ;;  %v492_v56 = vld [vmem:[%s1063_s2 + $0x128] sm:$0xff]  ;;  %v445_v12 = vld [vmem:[%s1063_s2 + $0x30] sm:$0xff] }
  0x1b   :  { %v143_v44 = vmul.f32 %v468_v34, %v715_v32  ;;  %v741_v46 = vstv %s681_s26  ;;  %v161_v47 = vmul.f32 %v473_v38, %v731_v40  ;;  %v162_v48 = vmul.f32 %v474_v39, %v731_v40  ;;  %v497_v59 = vld [vmem:[%s1063_s2 + $0x140] sm:$0xff]  ;;  %v498_v60 = vld [vmem:[%s1063_s2 + $0x148] sm:$0xff]  ;;  %v446_v14 = vld [vmem:[%s1063_s2 + $0x38] sm:$0xff] }
  0x1c   :  { %v89_v35 = vadd.f32 %v85_v22, %v70_v28  ;;  %v90_v36 = vadd.f32 %v86_v23, %v71_v29  ;;  %v755_v54 = vstv %s697_s9  ;;  %v180_v58 = vmul.f32 %v479_v45, %v741_v46  ;;  %v503_v2 = vld [vmem:[%s1063_s2 + $0x160] sm:$0xff]  ;;  %v40_v21 = vld [vmem:[%s1064_s3 + $0x18] sm:$0xff]  ;;  %v451_v22 = vld [vmem:[%s1063_s2 + $0x50] sm:$0xff]  ;;  %s826_s3 = sld [smem:[#allocation2 + $0xf]] }
  0x1d   :  { %v764_v57 = vstv %s699_s28  ;;  %v776_v61 = vstv %s708_s12  ;;  %v181_v1 = vmul.f32 %v480_v49, %v741_v46  ;;  %v783_v3 = vstv %s717_s15  ;;  %v452_v23 = vld [vmem:[%s1063_s2 + $0x58] sm:$0xff] }
  0x1e   :  { %v108_v42 = vadd.f32 %v104_v25, %v89_v35  ;;  %v109_v43 = vadd.f32 %v105_v30, %v90_v36  ;;  %v199_v6 = vmul.f32 %v485_v50, %v755_v54  ;;  %v200_v7 = vmul.f32 %v486_v51, %v755_v54  ;;  %v504_v24 = vld [vmem:[%s1063_s2 + $0x168] sm:$0xff]  ;;  %v457_v35 = vld [vmem:[%s1063_s2 + $0x70] sm:$0xff]  ;;  %v458_v36 = vld [vmem:[%s1063_s2 + $0x78] sm:$0xff] }
  0x1f   :  { %v218_v9 = vmul.f32 %v491_v55, %v764_v57  ;;  %v219_v10 = vmul.f32 %v492_v56, %v764_v57  ;;  %v237_v18 = vmul.f32 %v497_v59, %v776_v61  ;;  %v238_v20 = vmul.f32 %v498_v60, %v776_v61  ;;  %v510_v38 = vld [vmem:[%s1063_s2 + $0x188] sm:$0xff]  ;;  %v463_v49 = vld [vmem:[%s1063_s2 + $0x90] sm:$0xff]  ;;  %v464_v50 = vld [vmem:[%s1063_s2 + $0x98] sm:$0xff] }
  0x20   :  { %v127_v52 = vadd.f32 %v123_v33, %v108_v42  ;;  %v128_v53 = vadd.f32 %v124_v37, %v109_v43  ;;  %v256_v25 = vmul.f32 %v503_v2, %v783_v3  ;;  %v822_v26 = vstv %s734_s21  ;;  %v509_v37 = vld [vmem:[%s1063_s2 + $0x180] sm:$0xff]  ;;  %v516_v2 = vld [vmem:[%s1063_s2 + $0x1a8] sm:$0xff] }
  0x21   :  { %v50_v28 = vmul.f32 %v666_v8, %v45_v4  ;;  %v51_v29 = vmul.f32 %v666_v8, %v46_v5  ;;  %v68_v33 = vmul.f32 %v445_v12, %v676_v13  ;;  %v69_v34 = vmul.f32 %v446_v14, %v676_v13  ;;  %v515_v51 = vld [vmem:[%s1063_s2 + $0x1a0] sm:$0xff]  ;;  %v475_v14 = vld [vmem:[%s1063_s2 + $0xd0] sm:$0xff] }
  0x22   :  { %v146_v62 = vadd.f32 %v142_v41, %v127_v52  ;;  %v147_v63 = vadd.f32 %v143_v44, %v128_v53  ;;  %v87_v42 = vmul.f32 %v451_v22, %v685_v17  ;;  %v88_v43 = vmul.f32 %v452_v23, %v685_v17 }
  0x23   :  { %v54_v39 = vadd.f32 %v50_v28, %v39_v11  ;;  %v55_v41 = vadd.f32 %v51_v29, %v40_v21  ;;  %v106_v55 = vmul.f32 %v457_v35, %v690_v19  ;;  %v107_v56 = vmul.f32 %v458_v36, %v690_v19 }
  0x24   :  { %v165_v15 = vadd.f32 %v161_v47, %v146_v62  ;;  %v166_v16 = vadd.f32 %v162_v48, %v147_v63  ;;  %v257_v47 = vmul.f32 %v504_v24, %v783_v3  ;;  %v846_v48 = vstv %s766_s13  ;;  %v469_v63 = vld [vmem:[%s1063_s2 + $0xb0] sm:$0xff] }
  0x25   :  { %v72_v52 = vadd.f32 %v68_v33, %v54_v39  ;;  %v73_v53 = vadd.f32 %v69_v34, %v55_v41  ;;  %v275_v60 = vmul.f32 %v509_v37, %v822_v26  ;;  %v276_v62 = vmul.f32 %v510_v38, %v822_v26  ;;  %v482_v33 = vld [vmem:[%s1063_s2 + $0xf8] sm:$0xff]  ;;  %v527_v34 = vld [vmem:[%s1063_s2 + $0x1e0] sm:$0xff] }
  0x26   :  { %v184_v30 = vadd.f32 %v180_v58, %v165_v15  ;;  %v185_v31 = vadd.f32 %v181_v1, %v166_v16  ;;  %v470_v1 = vld [vmem:[%s1063_s2 + $0xb8] sm:$0xff]  ;;  %v294_v11 = vmul.f32 %v515_v51, %v846_v48  ;;  %v874_v12 = vstv %s806_s30  ;;  %v521_v16 = vld [vmem:[%s1063_s2 + $0x1c0] sm:$0xff] }
  0x27   :  { %v91_v4 = vadd.f32 %v87_v42, %v72_v52  ;;  %v92_v5 = vadd.f32 %v88_v43, %v73_v53  ;;  %v476_v15 = vld [vmem:[%s1063_s2 + $0xd8] sm:$0xff]  ;;  %v144_v22 = vmul.f32 %v469_v63, %v715_v32  ;;  %v145_v23 = vmul.f32 %v470_v1, %v715_v32  ;;  %v493_v52 = vld [vmem:[%s1063_s2 + $0x130] sm:$0xff] }
  0x28   :  { %v203_v44 = vadd.f32 %v199_v6, %v184_v30  ;;  %v204_v45 = vadd.f32 %v200_v7, %v185_v31  ;;  %v125_v6 = vmul.f32 %v463_v49, %v706_v27  ;;  %v126_v7 = vmul.f32 %v464_v50, %v706_v27  ;;  %v481_v31 = vld [vmem:[%s1063_s2 + $0xf0] sm:$0xff]  ;;  %v494_v53 = vld [vmem:[%s1063_s2 + $0x138] sm:$0xff] }
  0x29   :  { %v111_v21 = vadd.f32 %v107_v56, %v92_v5  ;;  %v295_v29 = vmul.f32 %v516_v2, %v846_v48  ;;  %v892_v30 = vstv %s826_s3  ;;  %v163_v37 = vmul.f32 %v475_v14, %v731_v40  ;;  %v499_v5 = vld [vmem:[%s1063_s2 + $0x150] sm:$0xff]  ;;  %v41_v14 = vld [vmem:[%s1066_s5] sm:$0x1] }
  0x2a   :  { %v222_v58 = vadd.f32 %v218_v9, %v203_v44  ;;  %v223_v59 = vadd.f32 %v219_v10, %v204_v45  ;;  %v164_v38 = vmul.f32 %v476_v15, %v731_v40  ;;  %v313_v42 = vmul.f32 %v521_v16, %v874_v12  ;;  %v487_v44 = vld [vmem:[%s1063_s2 + $0x110] sm:$0xff]  ;;  %v488_v45 = vld [vmem:[%s1063_s2 + $0x118] sm:$0xff]  ;;  %v453_v15 = vld [vmem:[%s1065_s4 + $0x2] sm:$0x1] }
  0x2b   :  { %v130_v36 = vadd.f32 %v126_v7, %v111_v21  ;;  %v182_v50 = vmul.f32 %v481_v31, %v741_v46  ;;  %v183_v51 = vmul.f32 %v482_v33, %v741_v46  ;;  %v201_v2 = vmul.f32 %v487_v44, %v755_v54  ;;  %v506_v21 = vld [vmem:[%s1063_s2 + $0x178] sm:$0xff]  ;;  %v459_v33 = vld [vmem:[%s1065_s4 + $0x3] sm:$0x1]  ;;  %v517_v44 = vld [vmem:[%s1063_s2 + $0x1b0] sm:$0xff] }
  0x2c   :  { %v241_v9 = vadd.f32 %v237_v18, %v222_v58  ;;  %v242_v10 = vadd.f32 %v238_v20, %v223_v59  ;;  %v522_v18 = vld [vmem:[%s1063_s2 + $0x1c8] sm:$0xff]  ;;  %v110_v20 = vadd.f32 %v106_v55, %v91_v4  ;;  %v332_v58 = vmul.f32 %v527_v34, %v892_v30 }
  0x2d   :  { %v314_v43 = vmul.f32 %v522_v18, %v874_v12  ;;  %v149_v49 = vadd.f32 %v145_v23, %v130_v36  ;;  %v202_v4 = vmul.f32 %v488_v45, %v755_v54  ;;  %v95_v36 = vmul.f32 %v453_v15, %v685_v17  ;;  %v518_v45 = vld [vmem:[%s1063_s2 + $0x1b8] sm:$0xff] }
  0x2e   :  { %v260_v24 = vadd.f32 %v256_v25, %v241_v9  ;;  %v261_v28 = vadd.f32 %v257_v47, %v242_v10  ;;  %v528_v25 = vld [vmem:[%s1063_s2 + $0x1e8] sm:$0xff]  ;;  %v129_v35 = vadd.f32 %v125_v6, %v110_v20  ;;  %v500_v6 = vld [vmem:[%s1063_s2 + $0x158] sm:$0xff]  ;;  %v220_v10 = vmul.f32 %v493_v52, %v764_v57  ;;  %v505_v20 = vld [vmem:[%s1063_s2 + $0x170] sm:$0xff] }
  0x2f   :  { %v333_v59 = vmul.f32 %v528_v25, %v892_v30  ;;  %v168_v1 = vadd.f32 %v164_v38, %v149_v49  ;;  %v240_v31 = vmul.f32 %v500_v6, %v776_v61  ;;  %v258_v38 = vmul.f32 %v505_v20, %v783_v3 }
  0x30   :  { %v279_v39 = vadd.f32 %v275_v60, %v260_v24  ;;  %v280_v41 = vadd.f32 %v276_v62, %v261_v28  ;;  %v148_v47 = vadd.f32 %v144_v22, %v129_v35  ;;  %v56_v60 = vld [vmem:[%s1065_s4] sm:$0x1]  ;;  %v447_v62 = vld [vmem:[%s1065_s4 + $0x1] sm:$0x1]  ;;  %v511_v35 = vld [vmem:[%s1063_s2 + $0x190] sm:$0xff] }
  0x31   :  { %v187_v18 = vadd.f32 %v183_v51, %v168_v1  ;;  %v57_v22 = vmul.f32 %v56_v60, %v666_v8  ;;  %v76_v23 = vmul.f32 %v447_v62, %v676_v13  ;;  %v512_v8 = vld [vmem:[%s1063_s2 + $0x198] sm:$0xff]  ;;  %v277_v49 = vmul.f32 %v511_v35, %v822_v26  ;;  %v471_v51 = vld [vmem:[%s1065_s4 + $0x5] sm:$0x1]  ;;  %v529_v1 = vld [vmem:[%s1063_s2 + $0x1f0] sm:$0xff] }
  0x32   :  { %v298_v55 = vadd.f32 %v294_v11, %v279_v39  ;;  %v299_v56 = vadd.f32 %v295_v29, %v280_v41  ;;  %v167_v63 = vadd.f32 %v163_v37, %v148_v47  ;;  %v221_v11 = vmul.f32 %v494_v53, %v764_v57  ;;  %v465_v41 = vld [vmem:[%s1065_s4 + $0x4] sm:$0x1] }
  0x33   :  { %v239_v29 = vmul.f32 %v499_v5, %v776_v61  ;;  %v206_v25 = vadd.f32 %v202_v4, %v187_v18  ;;  %v58_v13 = vadd.f32 %v57_v22, %v41_v14  ;;  %v259_v39 = vmul.f32 %v506_v21, %v783_v3 }
  0x34   :  { %v317_v7 = vadd.f32 %v313_v42, %v298_v55  ;;  %v318_v9 = vadd.f32 %v314_v43, %v299_v56  ;;  %v186_v16 = vadd.f32 %v182_v50, %v167_v63  ;;  %v114_v47 = vmul.f32 %v459_v33, %v690_v19  ;;  %v523_v55 = vld [vmem:[%s1063_s2 + $0x1d0] sm:$0xff]  ;;  %v524_v19 = vld [vmem:[%s1063_s2 + $0x1d8] sm:$0xff] }
  0x35   :  { %v225_v43 = vadd.f32 %v221_v11, %v206_v25  ;;  %v77_v17 = vadd.f32 %v76_v23, %v58_v13  ;;  %v278_v50 = vmul.f32 %v512_v8, %v822_v26  ;;  %v297_v60 = vmul.f32 %v518_v45, %v846_v48  ;;  %v495_v23 = vld [vmem:[%s1065_s4 + $0x9] sm:$0x1]  ;;  %v531_v45 = vld [vmem:[%s1065_s4 + $0xf] sm:$0x1] }
  0x36   :  { %v336_v24 = vadd.f32 %v332_v58, %v317_v7  ;;  %v337_v28 = vadd.f32 %v333_v59, %v318_v9  ;;  %v205_v34 = vadd.f32 %v201_v2, %v186_v16  ;;  %v133_v58 = vmul.f32 %v465_v41, %v706_v27  ;;  %v530_v2 = vld [vmem:[%s1063_s2 + $0x1f8] sm:$0xff]  ;;  %v483_v7 = vld [vmem:[%s1065_s4 + $0x7] sm:$0x1] }
  0x37   :  { %v244_v53 = vadd.f32 %v240_v31, %v225_v43  ;;  %v96_v56 = vadd.f32 %v95_v36, %v77_v17  ;;  %v296_v59 = vmul.f32 %v517_v44, %v846_v48  ;;  %v152_v27 = vmul.f32 %v471_v51, %v715_v32  ;;  %v489_v32 = vld [vmem:[%s1065_s4 + $0x8] sm:$0x1]  ;;  %v501_v31 = vld [vmem:[%s1065_s4 + $0xa] sm:$0x1] }
  0x38   :  { %v550_v37 = vpack.c.bf16 %v337_v28, %v336_v24  ;;  %v224_v42 = vadd.f32 %v220_v10, %v205_v34  ;;  %v315_v5 = vmul.f32 %v523_v55, %v874_v12  ;;  %v316_v6 = vmul.f32 %v524_v19, %v874_v12 }
  0x39   :  { %v263_v63 = vadd.f32 %v259_v39, %v244_v53  ;;  %v115_v4 = vadd.f32 %v114_v47, %v96_v56  ;;  %v334_v15 = vmul.f32 %v529_v1, %v892_v30  ;;  %v335_v16 = vmul.f32 %v530_v2, %v892_v30  ;;  %v519_v39 = vld [vmem:[%s1065_s4 + $0xd] sm:$0x1] }
  0x3a   :  { %551 = vmatpush3.bf16.msra.mxu0 %v550_v37  ;;  %v243_v52 = vadd.f32 %v239_v29, %v224_v42  ;;  %v190_v22 = vmul.f32 %v483_v7, %v741_v46  ;;  %v209_v29 = vmul.f32 %v489_v32, %v755_v54  ;;  %v228_v35 = vmul.f32 %v495_v23, %v764_v57  ;;  %v507_v46 = vld [vmem:[%s1065_s4 + $0xb] sm:$0x1]  ;;  %v513_v54 = vld [vmem:[%s1065_s4 + $0xc] sm:$0x1]  ;;  %v344_v37 = vld [vmem:[%s1061_s0] sm:$0xff] }
  0x3b   :  { %552 = vmatprep.subr.bf16.mxu0 %v599_v0  ;;  %v477_v0 = vld [vmem:[%s1065_s4 + $0x6] sm:$0x1]  ;;  %v282_v10 = vadd.f32 %v278_v50, %v263_v63  ;;  %v134_v11 = vadd.f32 %v133_v58, %v115_v4  ;;  %v247_v36 = vmul.f32 %v501_v31, %v776_v61  ;;  %v266_v57 = vmul.f32 %v507_v46, %v783_v3  ;;  %v525_v42 = vld [vmem:[%s1065_s4 + $0xe] sm:$0x1]  ;;  %s572_s4 = scalar_lea.vmem %s434_s16, 128 }
  0x3c   :  { %v262_v62 = vadd.f32 %v258_v38, %v243_v52  ;;  %v171_v14 = vmul.f32 %v477_v0, %v731_v40  ;;  %v285_v61 = vmul.f32 %v513_v54, %v822_v26  ;;  %v304_v44 = vmul.f32 %v519_v39, %v846_v48  ;;  %p573_p5 = scmp.ne.s32.totalorder %s434_s16, %s572_s4  ;;  %p578_p7 = scmp.lt.s32.totalorder %s572_s4, %s572_s4 }
  0x3d   :  { %v301_v20 = vadd.f32 %v297_v60, %v282_v10  ;;  %v153_v21 = vadd.f32 %v152_v27, %v134_v11  ;;  %v323_v17 = vmul.f32 %v525_v42, %v874_v12  ;;  %v346_v51 = vlaneseq }
  0x3e   :  { %v281_v9 = vadd.f32 %v277_v49, %v262_v62  ;;  %v342_v49 = vmul.f32 %v531_v45, %v892_v30  ;;  %p579_p8 = por %p578_p7, %p577_p6 }
  0x3f   :  { %v320_v28 = vadd.f32 %v316_v6, %v301_v20  ;;  %v172_v40 = vadd.f32 %v171_v14, %v153_v21  ;;  %v347_v52 = vshrl.u32 %v346_v51, 7 }
  0x40   :  { %v300_v18 = vadd.f32 %v296_v59, %v281_v9  ;;  %p580_p9 = pnand %p579_p8, %p573_p5 }
  0x41   :  { %v339_v34 = vadd.f32 %v335_v16, %v320_v28  ;;  %v191_v25 = vadd.f32 %v190_v22, %v172_v40  ;;  %v348_v53 = vsub.s32 0, %v347_v52 }
  0x42   :  { %v319_v24 = vadd.f32 %v315_v5, %v300_v18 }
  0x43   :  { %v210_v13 = vadd.f32 %v209_v29, %v191_v25 }
  0x44   :  { %v338_v33 = vadd.f32 %v334_v15, %v319_v24 }
  0x45   :  { %v229_v38 = vadd.f32 %v228_v35, %v210_v13 }
  0x46   :  { %v553_v8 = vpack.c.bf16 %v339_v34, %v338_v33 }
  0x47   :  { %v248_v41 = vadd.f32 %v247_v36, %v229_v38 }
  0x48   :  { %554 = vmatpush3.bf16.msra.mxu0 %v553_v8 }
  0x49   :  { %v267_v43 = vadd.f32 %v266_v57, %v248_v41 }
  0x4b   :  { %547 = vmatmul.mubr.msk.f32.vlgmr.msra.gmra.mrb[0].mxu0 %vm351_vm1, %v344_v37  ;;  %v286_v3 = vadd.f32 %v285_v61, %v267_v43 }
  0x4d   :  { %v305_v47 = vadd.f32 %v304_v44, %v286_v3 }
  0x4f   :  { %v324_v50 = vadd.f32 %v323_v17, %v305_v47 }
  0x51   :  { %v343_v26 = vadd.f32 %v342_v49, %v324_v50 }
  0x53   :  { %v349_v55 = vrot.slane %v343_v26, %v348_v53 }
 0x11e   :  { %v421_v19 = vpop.f32.mrb[0].mxu0 }
 0x11f   :  { %v422_v48 = vadd.f32 %v421_v19, %v349_v55  ;;  %v548_v56 = vpop.f32.mrb[1].mxu0 }
 0x121   :  { %426 = vst.msk [vmem:[#allocation5] sm:$0xff] %vm425_vm2, %v422_v48 }
 0x122   :  { %583 = shalt.err (!%p580_p9)
}
 0x123   :  { %s584_s28 = scalar_lea.hbm %s1067_s6, 128 }
 0x124   :  { %p585_p10 = scmp.ne.s32.totalorder %s1067_s6, %s584_s28  ;;  %p588_p11 = scmp.lt.u32.totalorder %s584_s28, %s1067_s6 }
 0x126   :  { %p590_p12 = pnand %p588_p11, %p585_p10 }
 0x128   :  { %593 = shalt.err (!%p590_p12)
}
 0x129   :  { %436 = dma.vmem_to_hbm [thread:$0]  %s434_s16, 128, %s1067_s6, [#allocation3]  }
 0x12a   :  { %596 = dma.done.wait [#allocation3], 128  }
 0x12b   :  { %597 = vsyncadd [#allocation3], 4294967168 }
 0x12c   :  { %440 = vsyncpa [#allocation3], 1 }
 0x12d   :  { %441 = vsyncpa [#allocation4], 1 }

</bundles_post_ra>
